<compile_context>
chip_gen: v7x
topology: tpu7x:2x2x1
jax: 0.10.0
libtpu: 0.0.40
codegen_flags: <defaults>
</compile_context>

<pallas_src>
import jax
import jax.numpy as jnp
from jax.experimental import pallas as pl
from jax.experimental.pallas import tpu as pltpu


def _tanh_like_kernel(alpha_ref, beta_ref, x_ref, o_ref):
    # f32-internal math (v5e has no bf16 VPU/EUP; preserves 1+(x*beta)^2
    # precision for bf16 I/O). Cast back to the I/O dtype on store.
    x = x_ref[...].astype(jnp.float32)          # (tile_b, tile_f)
    alpha = alpha_ref[...].astype(jnp.float32)  # (1, tile_f) broadcast rows
    beta = beta_ref[...].astype(jnp.float32)    # (1, tile_f)
    xb = x * beta
    # alpha * x / sqrt(1 + xb^2) -> rsqrt on the EUP, no divide.
    y = (alpha * x) * jax.lax.rsqrt(1.0 + xb * xb)
    o_ref[...] = y.astype(o_ref.dtype)


def _round_up(v, m):
    return ((v + m - 1) // m) * m


def tanh_like(x, alpha, beta, *, tile_b=None, tile_f=None,
              target_block_bytes=4 << 20, vmem_limit_bytes=48 << 20):
    """x: (B, F); alpha, beta: (1, F). Returns alpha*x/sqrt(1+(x*beta)^2)."""
    B, F = x.shape
    dtype = x.dtype
    itemsize = jnp.dtype(dtype).itemsize
    # Sublane packing multiple: 8 for 32-bit, 16 for 16-bit, 32 for 8-bit.
    sub = max(8, 32 // max(itemsize, 1))

    compiler_params_1d = pltpu.CompilerParams(
        dimension_semantics=("arbitrary",),
        vmem_limit_bytes=vmem_limit_bytes,
    )
    compiler_params_2d = pltpu.CompilerParams(
        dimension_semantics=("parallel", "parallel"),
        vmem_limit_bytes=vmem_limit_bytes,
    )

    # ---------- Path A: whole array as a single block ----------
    # block_shape == full array dims is exempt from the (8,128) rule, so
    # small / ragged inputs run with zero padding and zero post-slicing.
    if tile_b is None and tile_f is None and B * F * itemsize <= target_block_bytes:
        return pl.pallas_call(
            _tanh_like_kernel,
            out_shape=jax.ShapeDtypeStruct((B, F), dtype),
            grid_spec=pltpu.PrefetchScalarGridSpec(
                num_scalar_prefetch=0,
                grid=(1,),
                in_specs=[
                    pl.BlockSpec((1, F), lambda i: (0, 0)),   # alpha
                    pl.BlockSpec((1, F), lambda i: (0, 0)),   # beta
                    pl.BlockSpec((B, F), lambda i: (0, 0)),   # x
                ],
                out_specs=pl.BlockSpec((B, F), lambda i: (0, 0)),
            ),
            compiler_params=compiler_params_1d,
        )(alpha, beta, x)

    # ---------- Path B: tiled over (feature, batch) ----------
    # Prefer a full-row feature tile (tile_f == F): contiguous stride-free
    # DMA, widest unmasked vst, feature grid axis collapses to 1, and no lane
    # padding is ever needed (block dim == array dim is exempt from the 128
    # rule). Only fall back to a 128-multiple tile for extremely wide F.
    if tile_f is None:
        if sub * F * itemsize <= target_block_bytes:
            tile_f = F
        else:
            cols = max(128, (target_block_bytes // (sub * itemsize)) // 128 * 128)
            tile_f = min(2048, cols)
    elif tile_f != F:
        tile_f = _round_up(tile_f, 128)

    # Lane padding only in the rare tile_f < F fallback; batch never padded.
    Fp = F if tile_f == F else _round_up(F, tile_f)

    # Batch tile: ~target_block_bytes per (tile_b, tile_f) block, multiple of
    # the sublane packing. Double-buffered x + out (+ f32 temporaries) stays
    # well inside the 48 MiB scoped-VMEM request on v5e/v6e/v7x.
    if tile_b is None:
        rows = max(sub, target_block_bytes // (tile_f * itemsize))
        tile_b = min(_round_up(rows, sub), _round_up(B, sub))
    else:
        tile_b = max(sub, _round_up(tile_b, sub))

    xp, ap, bp = x, alpha, beta
    if Fp != F:
        xp = jnp.pad(x, ((0, 0), (0, Fp - F)))
        ap = jnp.pad(alpha, ((0, 0), (0, Fp - F)))
        bp = jnp.pad(beta, ((0, 0), (0, Fp - F)))

    # Batch axis innermost: alpha/beta block index is constant across inner
    # steps, so their tiles are DMA'd once per feature tile, not per step.
    # Ragged last batch block (B % tile_b != 0) is masked by Pallas.
    grid = (Fp // tile_f, pl.cdiv(B, tile_b))

    out = pl.pallas_call(
        _tanh_like_kernel,
        out_shape=jax.ShapeDtypeStruct((B, Fp), dtype),
        grid_spec=pltpu.PrefetchScalarGridSpec(
            num_scalar_prefetch=0,
            grid=grid,
            in_specs=[
                pl.BlockSpec((1, tile_f), lambda j, i: (0, j)),       # alpha
                pl.BlockSpec((1, tile_f), lambda j, i: (0, j)),       # beta
                pl.BlockSpec((tile_b, tile_f), lambda j, i: (i, j)),  # x
            ],
            out_specs=pl.BlockSpec((tile_b, tile_f), lambda j, i: (i, j)),
        ),
        compiler_params=compiler_params_2d,
    )(ap, bp, xp)

    if Fp != F:
        out = out[:, :F]
    return out


def make_params(n_input_neuron, n_output_neuron, dtype=jnp.float32):
    # Matches the PyTorch module's __init__:
    #   alpha = ones(1, n_out) / sqrt(n_in),  beta = ones(1, n_out) / n_in
    alpha = jnp.ones((1, n_output_neuron), dtype) / jnp.sqrt(
        jnp.asarray(float(n_input_neuron), dtype)
    )
    beta = jnp.ones((1, n_output_neuron), dtype) / float(n_input_neuron)
    return alpha, beta


def _ref(x, alpha, beta):
    xf = x.astype(jnp.float32)
    af = alpha.astype(jnp.float32)
    bf = beta.astype(jnp.float32)
    return (af * xf / jnp.sqrt(1.0 + jnp.square(xf * bf))).astype(x.dtype)


if __name__ == "__main__":
    key = jax.random.PRNGKey(0)
    k1, k2, k3 = jax.random.split(key, 3)

    # Case 1: nominal module shape (8 x 32, f32). Whole-array single block
    # (path A): no padding, no output slicing.
    n_in, n_out, batch = 32, 32, 8
    x = jax.random.normal(k1, (batch, n_out), dtype=jnp.float32)
    alpha, beta = make_params(n_in, n_out)
    out = jax.block_until_ready(tanh_like(x, alpha, beta))
    ref = _ref(x, alpha, beta)
    assert out.shape == x.shape and out.dtype == x.dtype
    assert jnp.allclose(out, ref, atol=1e-6, rtol=1e-6)

    # Case 2: bf16 with an explicit small batch tile -> tiled path B with a
    # full-row feature tile, multiple batch grid steps, f32-internal math.
    n_in2, n_out2, batch2 = 256, 256, 64
    x2 = jax.random.normal(k2, (batch2, n_out2), dtype=jnp.bfloat16)
    alpha2, beta2 = make_params(n_in2, n_out2, dtype=jnp.bfloat16)
    out2 = jax.block_until_ready(tanh_like(x2, alpha2, beta2, tile_b=16))
    ref2 = _ref(x2, alpha2, beta2)
    assert out2.shape == x2.shape and out2.dtype == x2.dtype
    assert jnp.allclose(out2.astype(jnp.float32), ref2.astype(jnp.float32),
                        atol=2e-2, rtol=2e-2)

    # Case 3: ragged batch (50 % 16 != 0) and non-128 feature width (192):
    # exercises the masked partial last batch block + full-row lane tile,
    # with zero padding anywhere in the wrapper.
    n_in3, n_out3, batch3 = 192, 192, 50
    x3 = jax.random.normal(k3, (batch3, n_out3), dtype=jnp.float32)
    alpha3, beta3 = make_params(n_in3, n_out3)
    out3 = jax.block_until_ready(tanh_like(x3, alpha3, beta3, tile_b=16))
    ref3 = _ref(x3, alpha3, beta3)
    assert out3.shape == x3.shape and out3.dtype == x3.dtype
    assert jnp.allclose(out3, ref3, atol=1e-6, rtol=1e-6)

    print("KERNEL_OK")
</pallas_src>

<mosaic_0001>
module attributes {stable_mosaic.version = 11 : i64} {
  func.func @_tanh_like_kernel(%arg0: i32, %arg1: memref<1x32xf32, #tpu.memory_space<vmem>>, %arg2: memref<1x32xf32, #tpu.memory_space<vmem>>, %arg3: memref<8x32xf32, #tpu.memory_space<vmem>>, %arg4: memref<8x32xf32, #tpu.memory_space<vmem>>) attributes {dimension_semantics = [#tpu.dimension_semantics<arbitrary>], iteration_bounds = array<i64: 1>, scalar_prefetch = 0 : i64, scratch_operands = 0 : i64, tpu.core_type = #tpu.core_type<tc>, window_params = [{pipeline_mode = #tpu.pipeline_mode<synchronous>, transform_indices = @transform_0, window_bounds = array<i64: 1, 32>}, {pipeline_mode = #tpu.pipeline_mode<synchronous>, transform_indices = @transform_1, window_bounds = array<i64: 1, 32>}, {pipeline_mode = #tpu.pipeline_mode<synchronous>, transform_indices = @transform_2, window_bounds = array<i64: 8, 32>}, {pipeline_mode = #tpu.pipeline_mode<synchronous>, transform_indices = @transform_3, window_bounds = array<i64: 8, 32>}]} {
    %c0 = arith.constant 0 : index
    %c0_0 = arith.constant 0 : index
    %0 = vector.load %arg3[%c0, %c0_0] : memref<8x32xf32, #tpu.memory_space<vmem>>, vector<8x32xf32>
    %c0_1 = arith.constant 0 : index
    %c0_2 = arith.constant 0 : index
    %1 = vector.load %arg1[%c0_1, %c0_2] : memref<1x32xf32, #tpu.memory_space<vmem>>, vector<1x32xf32>
    %c0_3 = arith.constant 0 : index
    %c0_4 = arith.constant 0 : index
    %2 = vector.load %arg2[%c0_3, %c0_4] : memref<1x32xf32, #tpu.memory_space<vmem>>, vector<1x32xf32>
    %3 = vector.broadcast %2 : vector<1x32xf32> to vector<8x32xf32>
    %4 = arith.mulf %0, %3 : vector<8x32xf32>
    %5 = vector.broadcast %1 : vector<1x32xf32> to vector<8x32xf32>
    %6 = arith.mulf %5, %0 : vector<8x32xf32>
    %7 = arith.mulf %4, %4 : vector<8x32xf32>
    %cst = arith.constant 1.000000e+00 : f32
    %8 = vector.broadcast %cst : f32 to vector<8x32xf32>
    %9 = arith.addf %8, %7 : vector<8x32xf32>
    %10 = math.rsqrt %9 : vector<8x32xf32>
    %11 = arith.mulf %6, %10 : vector<8x32xf32>
    %c0_5 = arith.constant 0 : index
    %c0_6 = arith.constant 0 : index
    %12 = vector.load %arg4[%c0_5, %c0_6] : memref<8x32xf32, #tpu.memory_space<vmem>>, vector<8x32xf32>
    tpu.vector_store %arg4[%c0_5, %c0_6], %11 {strides = array<i32>} : memref<8x32xf32, #tpu.memory_space<vmem>>, vector<8x32xf32>,
    return
  }
  func.func @transform_0(%arg0: i32) -> (i32, i32) {
    %c0_i32 = arith.constant 0 : i32
    %c0_i32_0 = arith.constant 0 : i32
    %c0_i32_1 = arith.constant 0 : i32
    return %c0_i32, %c0_i32_0 : i32, i32
  }
  func.func @transform_1(%arg0: i32) -> (i32, i32) {
    %c0_i32 = arith.constant 0 : i32
    %c0_i32_0 = arith.constant 0 : i32
    %c0_i32_1 = arith.constant 0 : i32
    return %c0_i32, %c0_i32_0 : i32, i32
  }
  func.func @transform_2(%arg0: i32) -> (i32, i32) {
    %c0_i32 = arith.constant 0 : i32
    %c0_i32_0 = arith.constant 0 : i32
    %c0_i32_1 = arith.constant 0 : i32
    return %c0_i32, %c0_i32_0 : i32, i32
  }
  func.func @transform_3(%arg0: i32) -> (i32, i32) {
    %c0_i32 = arith.constant 0 : i32
    %c0_i32_0 = arith.constant 0 : i32
    %c0_i32_1 = arith.constant 0 : i32
    return %c0_i32, %c0_i32_0 : i32, i32
  }
}

</mosaic_0001>

<bundles_post_ra>
// kernel: tpu_custom_call.1
= control target key start
LH: loop header
LB: loop body
LE: loop exit
PB: predicated region body
PF: predicated region fallthrough
CT: control target
= control target key end

     0   :  { %8 = vsyncpa [#allocation3], 0  ;;  %s219_s0 = inlined_call_operand.hbm [shape: f32[1,32], index: 0, kind: input, shape index: {}]   ;;  %s220_s1 = inlined_call_operand.vmem [shape: f32[1,32], index: 1, kind: input, shape index: {}]   ;;  %s221_s2 = inlined_call_operand.hbm [shape: f32[8,32], index: 2, kind: input, shape index: {}]   ;;  %s222_s3 = inlined_call_operand.hbm [shape: f32[8,32], index: 3, kind: output, shape index: {}]  }
   0x1   :  { %9 = vsyncpa [#allocation6], 0 }
   0x2   :  { %10 = vsyncpa [#allocation4], 0  ;;  %s157_s12 = smov [#allocation2]   ;;  %s158_s14 = smov [#allocation5]  }
   0x3   :  { %s17_s13 = sshll.u32 %s157_s12, 4  ;;  %s29_s15 = sshll.u32 %s158_s14, 4  ;;  %s18_s13 = int_to_ptr.vmem [resolvable:$true] %s17_s13  ;;  %s30_s15 = int_to_ptr.vmem [resolvable:$true] %s29_s15 }
   0x4   :  { %s85_s18 = scalar_lea.hbm %s219_s0, 16 }
   0x5   :  { %p86_p0 = scmp.ne.s32.totalorder %s219_s0, %s85_s18  ;;  %p89_p1 = scmp.lt.u32.totalorder %s85_s18, %s219_s0 }
   0x7   :  { %p91_p2 = pnand %p89_p1, %p86_p0 }
   0x9   :  { %94 = shalt.err (!%p91_p2)
}
   0xa   :  { %s95_s23 = scalar_lea.vmem %s18_s13, 16  ;;  %s99_s24 = scalar_lea.vmem %s18_s13, 32 }
   0xb   :  { %p96_p3 = scmp.ne.s32.totalorder %s18_s13, %s95_s23  ;;  %p100_p4 = scmp.lt.s32.totalorder %s18_s13, %s18_s13 }
   0xc   :  { %p101_p5 = scmp.lt.s32.totalorder %s99_s24, %s95_s23 }
   0xe   :  { %p102_p6 = por %p101_p5, %p100_p4 }
  0x10   :  { %p103_p7 = pnand %p102_p6, %p96_p3 }
  0x12   :  { %106 = shalt.err (!%p103_p7)
}
  0x13   :  { %20 = dma.hbm_to_vmem [thread:$0]  %s219_s0, 16, %s18_s13, [#allocation3]  }
  0x14   :  { %s107_s29 = scalar_lea.hbm %s221_s2, 128 }
  0x15   :  { %p108_p8 = scmp.ne.s32.totalorder %s221_s2, %s107_s29  ;;  %p111_p9 = scmp.lt.u32.totalorder %s107_s29, %s221_s2 }
  0x17   :  { %p113_p10 = pnand %p111_p9, %p108_p8 }
  0x19   :  { %116 = shalt.err (!%p113_p10)
}
  0x1a   :  { %s117_s7 = scalar_lea.vmem %s30_s15, 128  ;;  %p122_p12 = scmp.lt.s32.totalorder %s30_s15, %s30_s15 }
  0x1b   :  { %p118_p11 = scmp.ne.s32.totalorder %s30_s15, %s117_s7  ;;  %p123_p13 = scmp.lt.s32.totalorder %s117_s7, %s117_s7 }
  0x1d   :  { %p124_p0 = por %p123_p13, %p122_p12 }
  0x1f   :  { %p125_p1 = pnand %p124_p0, %p118_p11 }
  0x21   :  { %128 = shalt.err (!%p125_p1)
}
  0x22   :  { %32 = dma.hbm_to_vmem [thread:$0]  %s221_s2, 128, %s30_s15, [#allocation6]  }
  0x23   :  { %151 = dma.done.wait [#allocation3], 16  }
  0x24   :  { %152 = vsyncadd [#allocation3], 4294967280 }
  0x25   :  { %153 = dma.done.wait [#allocation6], 128  }
  0x26   :  { %154 = vsyncadd [#allocation6], 4294967168  ;;  %v39_v0 = vld [vmem:[#allocation5] sm:$0xff]  ;;  %v78_v1 = vld [vmem:[%s220_s1] ss:$0 sm:$0xff]  ;;  %s159_s11 = smov [#allocation7]  }
  0x27   :  { %v48_v2 = vmul.f32 %v78_v1, %v39_v0  ;;  %v79_v5 = vld [vmem:[#allocation2] ss:$0 sm:$0xff]  ;;  %s68_s12 = sshll.u32 %s159_s11, 4  ;;  %vm60_vm0 = vcmask 261120   ;;  %s69_s12 = int_to_ptr.vmem [resolvable:$true] %s68_s12 }
  0x28   :  { %v55_v6 = vmul.f32 %v79_v5, %v39_v0  ;;  %s129_s2 = scalar_lea.vmem %s69_s12, 128  ;;  %p134_p3 = scmp.lt.s32.totalorder %s69_s12, %s69_s12 }
  0x29   :  { %v56_v3 = vmul.f32 %v48_v2, %v48_v2  ;;  %p130_p2 = scmp.ne.s32.totalorder %s69_s12, %s129_s2  ;;  %p135_p4 = scmp.lt.s32.totalorder %s129_s2, %s129_s2 }
  0x2b   :  { %v57_v4 = vadd.f32 1.0, %v56_v3  ;;  %p136_p5 = por %p135_p4, %p134_p3 }
  0x2d   :  { %83 = vrsqrt.f32 %v57_v4  ;;  %p137_p6 = pnand %p136_p5, %p130_p2 }
  0x37   :  { %v84_v7 = vpop.eup %83 }
  0x38   :  { %v59_v8 = vmul.f32 %v84_v7, %v55_v6 }
  0x3a   :  { %61 = vst.msk [vmem:[#allocation7] sm:$0xff] %vm60_vm0, %v59_v8 }
  0x3b   :  { %140 = shalt.err (!%p137_p6)
}
  0x3c   :  { %s141_s14 = scalar_lea.hbm %s222_s3, 128 }
  0x3d   :  { %p142_p7 = scmp.ne.s32.totalorder %s222_s3, %s141_s14  ;;  %p145_p8 = scmp.lt.u32.totalorder %s141_s14, %s222_s3 }
  0x3f   :  { %p147_p9 = pnand %p145_p8, %p142_p7 }
  0x41   :  { %150 = shalt.err (!%p147_p9)
}
  0x42   :  { %71 = dma.vmem_to_hbm [thread:$0]  %s69_s12, 128, %s222_s3, [#allocation4]  }
  0x43   :  { %155 = dma.done.wait [#allocation4], 128  }
  0x44   :  { %156 = vsyncadd [#allocation4], 4294967168 }
  0x45   :  { %75 = vsyncpa [#allocation3], 1 }
  0x46   :  { %76 = vsyncpa [#allocation6], 1 }
  0x47   :  { %77 = vsyncpa [#allocation4], 1 }

</bundles_post_ra>
